<compile_context>
chip_gen: v7x
topology: tpu7x:2x2x1
jax: 0.10.0
libtpu: 0.0.40
codegen_flags: <defaults>
</compile_context>

<pallas_src>
import functools

import jax
import jax.numpy as jnp
from jax import lax
from jax.experimental import pallas as pl
from jax.experimental.pallas import tpu as pltpu


def _round_up(a: int, b: int) -> int:
    return ((a + b - 1) // b) * b


def _choose_tb(nc: int, row_bytes: int, pack: int) -> int:
    """Rows (flattened images) per block.

    Multiple of the dtype sublane pack, ~4 MiB per input buffer (good HBM
    roofline utilization while leaving headroom under v7x's 64 MiB VMEM with
    double buffering + elementwise intermediates).  Keep >= 2 blocks when
    possible so both v7x TensorCores get work from the "parallel" grid axis.
    """
    if nc <= pack:
        return nc                      # one block; first dim == full array dim
    target_bytes = 4 << 20
    rows = max(1, target_bytes // row_bytes)
    tb = max(pack, (rows // pack) * pack)
    tb = min(tb, _round_up((nc + 1) // 2, pack))
    return tb


def _tv_kernel(x_ref, mw_ref, mh_ref, o_ref, *, shift_w, shift_h, has_w, has_h,
               nc, tb):
    # x_ref : (TB, Pc) lane-dense block of flattened (h*W + w) images.
    # mw_ref/mh_ref : (1, Pc) resident column masks (compute dtype, 0/1).
    # o_ref : (1, 1, 128) lane-padded per-block partial (same value all lanes).
    x = x_ref[...]
    compute_dtype = mw_ref.dtype
    if x.dtype != compute_dtype:
        x = x.astype(compute_dtype)

    # Ragged last row-block: zero out-of-range rows (static check; usually off).
    if nc % tb != 0:
        rows = lax.broadcasted_iota(jnp.int32, (x.shape[0], 1), 0) \
            + pl.program_id(0) * tb
        x = jnp.where(rows < nc, x, jnp.zeros((), x.dtype))

    term = None
    if has_w:
        # |x[j] - x[j-1]|, valid where j % W != 0 (mask also kills the lane
        # wrap-around at j == 0 and any padded tail columns).
        term = jnp.abs(x - pltpu.roll(x, shift=shift_w, axis=1)) * mw_ref[...]
    if has_h:
        # |x[j] - x[j-W]|, valid where j >= W (mask kills the wrap + padding).
        th = jnp.abs(x - pltpu.roll(x, shift=shift_h, axis=1)) * mh_ref[...]
        term = th if term is None else term + th

    if term is None:
        total = jnp.float32(0.0)
    else:
        total = jnp.sum(term.astype(jnp.float32))
    o_ref[...] = jnp.full(o_ref.shape, total, dtype=o_ref.dtype)


def tv_loss(x):
    """Total variation: sum |x[...,:-1]-x[...,1:]| over W and over H axes."""
    N, C, H, W = x.shape
    NC = N * C
    P = H * W
    if NC == 0 or P == 0:
        return jnp.float32(0.0)

    x2 = x.reshape(NC, P)                       # free: contiguous reshape
    itemsize = x2.dtype.itemsize
    compute_dtype = x2.dtype if x2.dtype == jnp.bfloat16 else jnp.float32

    # Lane axis: use the full H*W when already 128-aligned (no pad, no extra
    # HBM pass); otherwise pad only the tail columns (masked to zero below).
    if P % 128 == 0:
        Pc = P
    else:
        Pc = _round_up(P, 128)
        x2 = jnp.pad(x2, ((0, 0), (0, Pc - P)))

    pack = max(8, 32 // itemsize)               # 8 f32, 16 bf16, 32 int8/fp8
    row_bytes = _round_up(Pc, 128) * itemsize
    TB = _choose_tb(NC, row_bytes, pack)
    G = -(-NC // TB)                            # number of blocks

    # Resident column masks, fetched once (constant index_map).
    cols = jnp.arange(Pc, dtype=jnp.int32)
    mask_w = (((cols % W) != 0) & (cols < P)).astype(compute_dtype)[None, :]
    mask_h = ((cols >= W) & (cols < P)).astype(compute_dtype)[None, :]

    kernel = functools.partial(
        _tv_kernel,
        shift_w=1, shift_h=W,
        has_w=(W > 1), has_h=(H > 1),
        nc=NC, tb=TB)

    cost = pl.CostEstimate(
        flops=8 * NC * P,
        transcendentals=0,
        bytes_accessed=NC * Pc * itemsize
        + 2 * Pc * jnp.dtype(compute_dtype).itemsize
        + G * 128 * 4,
    )

    partials = pl.pallas_call(
        kernel,
        out_shape=jax.ShapeDtypeStruct((G, 1, 128), jnp.float32),
        grid_spec=pltpu.PrefetchScalarGridSpec(
            num_scalar_prefetch=0,
            grid=(G,),
            in_specs=[
                pl.BlockSpec((TB, Pc), lambda i: (i, 0)),
                pl.BlockSpec((1, Pc), lambda i: (0, 0)),
                pl.BlockSpec((1, Pc), lambda i: (0, 0)),
            ],
            out_specs=pl.BlockSpec((1, 1, 128), lambda i: (i, 0, 0)),
        ),
        compiler_params=pltpu.CompilerParams(
            dimension_semantics=("parallel",),
            vmem_limit_bytes=48 * 1024 * 1024,
        ),
        cost_estimate=cost,
    )(x2, mask_w, mask_h)

    # Sum the tiny per-block partials in float32.
    return jnp.sum(partials[:, 0, 0])


if __name__ == "__main__":
    key = jax.random.PRNGKey(0)
    x = jax.random.normal(key, (2, 4, 16, 16), dtype=jnp.float32)

    result = jax.block_until_ready(tv_loss(x))

    # Pure-JAX reference (same semantics as the torch module).
    ref = (
        jnp.sum(jnp.abs(x[:, :, :, :-1] - x[:, :, :, 1:]))
        + jnp.sum(jnp.abs(x[:, :, :-1, :] - x[:, :, 1:, :]))
    )
    assert jnp.allclose(result, ref, rtol=1e-5, atol=1e-5), (result, ref)

    print("KERNEL_OK")
</pallas_src>

<mosaic_0001>
module attributes {stable_mosaic.version = 11 : i64} {
  func.func @_tv_kernel(%arg0: i32, %arg1: memref<8x256xf32, #tpu.memory_space<vmem>>, %arg2: memref<1x256xf32, #tpu.memory_space<vmem>>, %arg3: memref<1x256xf32, #tpu.memory_space<vmem>>, %arg4: memref<1x1x128xf32, #tpu.memory_space<vmem>>) attributes {dimension_semantics = [#tpu.dimension_semantics<parallel>], iteration_bounds = array<i64: 1>, scalar_prefetch = 0 : i64, scratch_operands = 0 : i64, tpu.core_type = #tpu.core_type<tc>, window_params = [{transform_indices = @transform_0, window_bounds = array<i64: 8, 256>}, {pipeline_mode = #tpu.pipeline_mode<synchronous>, transform_indices = @transform_1, window_bounds = array<i64: 1, 256>}, {pipeline_mode = #tpu.pipeline_mode<synchronous>, transform_indices = @transform_2, window_bounds = array<i64: 1, 256>}, {transform_indices = @transform_3, window_bounds = array<i64: 1, 1, 128>}]} {
    %c0 = arith.constant 0 : index
    %c0_0 = arith.constant 0 : index
    %0 = vector.load %arg1[%c0, %c0_0] : memref<8x256xf32, #tpu.memory_space<vmem>>, vector<8x256xf32>
    %c1_i32 = arith.constant 1 : i32
    %1 = tpu.dynamic_rotate %0 by %c1_i32 dim 1 : vector<8x256xf32>, i32 -> vector<8x256xf32>
    %2 = arith.subf %0, %1 : vector<8x256xf32>
    %3 = math.absf %2 : vector<8x256xf32>
    %c0_1 = arith.constant 0 : index
    %c0_2 = arith.constant 0 : index
    %4 = vector.load %arg2[%c0_1, %c0_2] : memref<1x256xf32, #tpu.memory_space<vmem>>, vector<1x256xf32>
    %5 = vector.broadcast %4 : vector<1x256xf32> to vector<8x256xf32>
    %6 = arith.mulf %3, %5 : vector<8x256xf32>
    %c16_i32 = arith.constant 16 : i32
    %7 = tpu.dynamic_rotate %0 by %c16_i32 dim 1 : vector<8x256xf32>, i32 -> vector<8x256xf32>
    %8 = arith.subf %0, %7 : vector<8x256xf32>
    %9 = math.absf %8 : vector<8x256xf32>
    %c0_3 = arith.constant 0 : index
    %c0_4 = arith.constant 0 : index
    %10 = vector.load %arg3[%c0_3, %c0_4] : memref<1x256xf32, #tpu.memory_space<vmem>>, vector<1x256xf32>
    %11 = vector.broadcast %10 : vector<1x256xf32> to vector<8x256xf32>
    %12 = arith.mulf %9, %11 : vector<8x256xf32>
    %13 = arith.addf %6, %12 : vector<8x256xf32>
    %14 = vector.shape_cast %13 : vector<8x256xf32> to vector<1x8x256xf32>
    %cst = arith.constant dense<0.000000e+00> : vector<1xf32>
    %15 = vector.multi_reduction <add>, %14, %cst [1, 2] : vector<1x8x256xf32> to vector<1xf32>
    %16 = vector.shape_cast %15 : vector<1xf32> to vector<1x1x1xf32>
    %17 = vector.extract %16[0, 0, 0] : f32 from vector<1x1x1xf32>
    %18 = vector.broadcast %17 : f32 to vector<1x1x128xf32>
    %c0_5 = arith.constant 0 : index
    %c0_6 = arith.constant 0 : index
    %c0_7 = arith.constant 0 : index
    %19 = vector.load %arg4[%c0_5, %c0_6, %c0_7] : memref<1x1x128xf32, #tpu.memory_space<vmem>>, vector<1x1x128xf32>
    tpu.vector_store %arg4[%c0_5, %c0_6, %c0_7], %18 {strides = array<i32>} : memref<1x1x128xf32, #tpu.memory_space<vmem>>, vector<1x1x128xf32>,
    return
  }
  func.func @transform_0(%arg0: i32) -> (i32, i32) {
    %c0_i32 = arith.constant 0 : i32
    %c0_i32_0 = arith.constant 0 : i32
    return %arg0, %c0_i32 : i32, i32
  }
  func.func @transform_1(%arg0: i32) -> (i32, i32) {
    %c0_i32 = arith.constant 0 : i32
    %c0_i32_0 = arith.constant 0 : i32
    %c0_i32_1 = arith.constant 0 : i32
    return %c0_i32, %c0_i32_0 : i32, i32
  }
  func.func @transform_2(%arg0: i32) -> (i32, i32) {
    %c0_i32 = arith.constant 0 : i32
    %c0_i32_0 = arith.constant 0 : i32
    %c0_i32_1 = arith.constant 0 : i32
    return %c0_i32, %c0_i32_0 : i32, i32
  }
  func.func @transform_3(%arg0: i32) -> (i32, i32, i32) {
    %c0_i32 = arith.constant 0 : i32
    %c0_i32_0 = arith.constant 0 : i32
    %c0_i32_1 = arith.constant 0 : i32
    return %arg0, %c0_i32, %c0_i32_0 : i32, i32, i32
  }
}

</mosaic_0001>

<bundles_post_ra>
// kernel: tpu_custom_call.1
= control target key start
LH: loop header
LB: loop body
LE: loop exit
PB: predicated region body
PF: predicated region fallthrough
CT: control target
= control target key end

     0   :  { %8 = vsyncpa [#allocation3], 0  ;;  %s218_s0 = inlined_call_operand.hbm [shape: f32[8,256], index: 0, kind: input, shape index: {}]   ;;  %s219_s1 = inlined_call_operand.vmem [shape: f32[1,256], index: 1, kind: input, shape index: {}]   ;;  %s220_s2 = inlined_call_operand.vmem [shape: f32[1,256], index: 2, kind: input, shape index: {}]   ;;  %s221_s3 = inlined_call_operand.hbm [shape: f32[1,1,128], index: 3, kind: output, shape index: {}]  }
   0x1   :  { %9 = vsyncpa [#allocation4], 0  ;;  %s164_s12 = smov [#allocation2]   ;;  %s116_s16 = scalar_lea.hbm %s218_s0, 256 }
   0x2   :  { %s16_s13 = sshll.u32 %s164_s12, 4  ;;  %p117_p0 = scmp.ne.s32.totalorder %s218_s0, %s116_s16  ;;  %s17_s13 = int_to_ptr.vmem [resolvable:$true] %s16_s13 }
   0x3   :  { %p120_p1 = scmp.lt.u32.totalorder %s116_s16, %s218_s0 }
   0x5   :  { %p122_p2 = pnand %p120_p1, %p117_p0 }
   0x7   :  { %125 = shalt.err (!%p122_p2)
}
   0x8   :  { %s126_s21 = scalar_lea.vmem %s17_s13, 256  ;;  %p131_p4 = scmp.lt.s32.totalorder %s17_s13, %s17_s13 }
   0x9   :  { %p127_p3 = scmp.ne.s32.totalorder %s17_s13, %s126_s21  ;;  %p132_p5 = scmp.lt.s32.totalorder %s126_s21, %s126_s21 }
   0xb   :  { %p133_p6 = por %p132_p5, %p131_p4 }
   0xd   :  { %p134_p7 = pnand %p133_p6, %p127_p3 }
   0xf   :  { %137 = shalt.err (!%p134_p7)
}
  0x10   :  { %19 = dma.hbm_to_vmem [thread:$0]  %s218_s0, 256, %s17_s13, [#allocation3]  }
  0x11   :  { %160 = dma.done.wait [#allocation3], 256  }
  0x12   :  { %161 = vsyncadd [#allocation3], 4294967040  ;;  %v27_v0 = vld [vmem:[#allocation2] sm:$0xff]  ;;  %s165_s24 = smov 16   ;;  %s166_s25 = smov 1   ;;  %v28_v1 = vld [vmem:[#allocation2 + $0x8] sm:$0xff]  ;;  %v33_v2 = vlaneseq }
  0x13   :  { %56 = vrot.lane.b32.xlu1 %v27_v0, %s165_s24  ;;  %29 = vrot.lane.b32.xlu0 %v27_v0, %s166_s25  ;;  %v67_v9 = vld [vmem:[%s220_s2] sm:$0x3] }
  0x14   :  { %v45_v3 = vshrl.u32 %v33_v2, 7  ;;  %v34_v4 = vand.u32 127, %v33_v2  ;;  %v42_v10 = vld [vmem:[%s219_s1] sm:$0x3]  ;;  %s167_s1 = smov [#allocation5]  }
  0x15   :  { %s101_s2 = sshll.u32 %s167_s1, 4  ;;  %s102_s2 = int_to_ptr.vmem [resolvable:$true] %s101_s2 }
  0x16   :  { %v46_v7 = vsub.s32 0, %v45_v3  ;;  %v50_v8 = vsub.s32 1, %v45_v3  ;;  %vm60_vm0 = vcmp.lt.s32.totalorder %v34_v4, 16  ;;  %vm35_vm1 = vcmp.lt.s32.totalorder %v34_v4, 1  ;;  %s138_s30 = scalar_lea.vmem %s102_s2, 16  ;;  %s142_s4 = scalar_lea.vmem %s102_s2, 32 }
  0x17   :  { %58 = vrot.lane.b32.xlu1 %v28_v1, %s165_s24  ;;  %31 = vrot.lane.b32.xlu0 %v28_v1, %s166_s25  ;;  %p139_p8 = scmp.ne.s32.totalorder %s102_s2, %s138_s30  ;;  %p143_p9 = scmp.lt.s32.totalorder %s102_s2, %s102_s2 }
  0x18   :  { %v72_v11 = vrot.slane %v67_v9, %v46_v7  ;;  %v76_v12 = vrot.slane %v67_v9, %v50_v8  ;;  %v47_v14 = vrot.slane %v42_v10, %v46_v7  ;;  %v51_v24 = vrot.slane %v42_v10, %v50_v8  ;;  %p144_p10 = scmp.lt.s32.totalorder %s142_s4, %s138_s30 }
  0x1a   :  { %p145_p11 = por %p144_p10, %p143_p9 }
  0x1c   :  { %p146_p12 = pnand %p145_p11, %p139_p8 }
  0x85   :  { %v57_v5 = vpop.permute.xlu1 %56  ;;  %v30_v6 = vpop.permute.xlu0 %29 }
  0x89   :  { %v59_v13 = vpop.permute.xlu1 %58  ;;  %v32_v15 = vpop.permute.xlu0 %31 }
  0x8a   :  { %v61_v16 = vsel %vm60_vm0, %v57_v5, %v59_v13  ;;  %v62_v17 = vsel %vm60_vm0, %v59_v13, %v57_v5  ;;  %v36_v18 = vsel %vm35_vm1, %v30_v6, %v32_v15  ;;  %v37_v19 = vsel %vm35_vm1, %v32_v15, %v30_v6 }
  0x8b   :  { %v63_v20 = vsub.f32 %v27_v0, %v62_v17  ;;  %v64_v21 = vsub.f32 %v28_v1, %v61_v16  ;;  %v38_v22 = vsub.f32 %v27_v0, %v37_v19  ;;  %v39_v23 = vsub.f32 %v28_v1, %v36_v18 }
  0x8d   :  { %v65_v25 = vand.u32 2147483647, %v63_v20  ;;  %v66_v26 = vand.u32 2147483647, %v64_v21  ;;  %v40_v27 = vand.u32 2147483647, %v38_v22 }
  0x8e   :  { %v41_v28 = vand.u32 2147483647, %v39_v23 }
  0x8f   :  { %v79_v29 = vmul.f32 %v72_v11, %v65_v25  ;;  %v80_v30 = vmul.f32 %v76_v12, %v66_v26  ;;  %v54_v31 = vmul.f32 %v47_v14, %v40_v27 }
  0x90   :  { %v55_v32 = vmul.f32 %v51_v24, %v41_v28 }
  0x91   :  { %v81_v33 = vadd.f32 %v79_v29, %v54_v31 }
  0x92   :  { %v82_v34 = vadd.f32 %v80_v30, %v55_v32 }
  0x94   :  { %v83_v35 = vadd.f32 %v82_v34, %v81_v33 }
  0x96   :  { %84 = vadd.xlane.f32.xlu0 %v83_v35 }
 0x123   :  { %v85_v36 = vpop.xlane.xlu0 %84 }
 0x124   :  { %v86_v37 = vrot.slane %v85_v36, 4 }
 0x126   :  { %v87_v38 = vadd.f32 %v86_v37, %v85_v36 }
 0x128   :  { %v88_v39 = vrot.slane %v87_v38, 2 }
 0x12a   :  { %v89_v40 = vadd.f32 %v88_v39, %v87_v38 }
 0x12c   :  { %v90_v41 = vrot.slane %v89_v40, 1 }
 0x12e   :  { %v91_v42 = vadd.f32 %v90_v41, %v89_v40 }
 0x130   :  { %110 = vpush %v91_v42 }
 0x161   :  { %s111_s29 = spop %110 }
 0x162   :  { %v93_v43 = vstv %s111_s29 }
 0x163   :  { %94 = vst [vmem:[#allocation5] sm:$0x1] %v93_v43 }
 0x164   :  { %149 = shalt.err (!%p146_p12)
}
 0x165   :  { %s150_s7 = scalar_lea.hbm %s221_s3, 16 }
 0x166   :  { %p151_p13 = scmp.ne.s32.totalorder %s221_s3, %s150_s7  ;;  %p154_p0 = scmp.lt.u32.totalorder %s150_s7, %s221_s3 }
 0x168   :  { %p156_p1 = pnand %p154_p0, %p151_p13 }
 0x16a   :  { %159 = shalt.err (!%p156_p1)
}
 0x16b   :  { %104 = dma.vmem_to_hbm [thread:$0]  %s102_s2, 16, %s221_s3, [#allocation4]  }
 0x16c   :  { %162 = dma.done.wait [#allocation4], 16  }
 0x16d   :  { %163 = vsyncadd [#allocation4], 4294967280 }
 0x16e   :  { %108 = vsyncpa [#allocation3], 1 }
 0x16f   :  { %109 = vsyncpa [#allocation4], 1 }

</bundles_post_ra>
